<compile_context>
chip_gen: v5e
topology: v5e:2x2
jax: 0.10.0
libtpu: 0.0.40
codegen_flags: <defaults>
</compile_context>

<pallas_src>
import functools

import jax
import jax.numpy as jnp
from jax.experimental import pallas as pl
from jax.experimental.pallas import tpu as pltpu  # noqa: F401  (TPU backend)


def _pad128(n):
    return ((int(n) + 127) // 128) * 128


# ------------------------------ Pallas kernel --------------------------------

def _make_kernel(stacks_meta):
    """stacks_meta = (up, down, mid); each a tuple of per-layer static tuples
    (rows_x, p_out, col_x, col_ig, col_ctx) indexing the packed slabs."""
    up_meta, down_meta, mid_meta = stacks_meta

    def kernel(x_ref, ctx_ref, wctx_ref, bctx_ref,
               w_up_ref, w_down_ref, w_mid_ref, out_ref):
        x00 = x_ref[...]                            # (B, P_in)  f32, lane-padded
        c = ctx_ref[...].astype(jnp.bfloat16)       # (B, ctx)   bf16 (cast once)

        # Every ctx projection (+ fused bias) of every layer of every stack in
        # ONE MXU pass; per-layer slices below are tile-aligned f32 views.
        cproj = (jnp.dot(c, wctx_ref[...], preferred_element_type=jnp.float32)
                 + bctx_ref[...])                   # (B, C_ctx) f32

        def run_stack(h, w_ref, meta):
            # Static Python unroll over layers; all slices are at 128-lane /
            # 8-sublane multiples -> zero-cost views, no XLU lane shuffles.
            for rows_x, p, col_x, col_ig, col_c in meta:
                wx = w_ref[0:rows_x, col_x:col_x + p]          # (rows_x, p) bf16
                wig = w_ref[0:p, col_ig:col_ig + 2 * p]        # (p, 2p)     bf16
                pre = jnp.dot(h.astype(jnp.bfloat16), wx,
                              preferred_element_type=jnp.float32)
                hh = jnp.tanh(pre + cproj[:, col_c:col_c + p])          # f32
                ig = (jnp.dot(hh.astype(jnp.bfloat16), wig,
                              preferred_element_type=jnp.float32)
                      + cproj[:, col_c + p:col_c + 3 * p])              # f32
                # info / gate each own a full 128-lane tile -> free split.
                h = ig[:, :p] * jax.nn.sigmoid(ig[:, p:])
            return h

        x10 = run_stack(x00, w_up_ref, up_meta)                # in  -> out
        x10_down = run_stack(x10, w_down_ref, down_meta)       # out -> in
        # Concat at a 128-lane tile boundary; mid weights were row-packed at
        # init to match this [x00_block | x10_down_block] lane layout.
        x01 = run_stack(jnp.concatenate([x00, x10_down], axis=1),
                        w_mid_ref, mid_meta)                   # 2*in -> in

        # Single lane-dense store: [x10_block | x01_block], width = P_out+P_in.
        out_ref[...] = jnp.concatenate([x10, x01], axis=1).astype(out_ref.dtype)

    return kernel


@functools.partial(jax.jit, static_argnames=("meta",))
def up_triangle_forward(packed, x, ctx, *, meta):
    """Fused UpTriangle forward: one pallas_call for the whole module."""
    in_f, out_f, p_in, p_out, stacks_meta = meta
    batch = x.shape[0]
    x_pad = jnp.pad(x, ((0, 0), (0, p_in - x.shape[1])))  # lane-pad to 128

    # Advisory cost estimate for XLA scheduling around the custom call.
    flops = 2 * batch * ctx.shape[1] * packed["w_ctx"].shape[1]
    trans = 0
    for st in stacks_meta:
        for rows_x, p, *_ in st:
            flops += 2 * batch * (rows_x * p + p * 2 * p)
            trans += 2 * batch * p
    bytes_accessed = (x_pad.size * 4 + ctx.size * 4
                      + sum(int(a.size) * a.dtype.itemsize
                            for a in packed.values())
                      + batch * (p_out + p_in) * 4)

    out = pl.pallas_call(
        _make_kernel(stacks_meta),
        out_shape=jax.ShapeDtypeStruct((batch, p_out + p_in), jnp.float32),
        cost_estimate=pl.CostEstimate(flops=int(flops),
                                      transcendentals=int(trans),
                                      bytes_accessed=int(bytes_accessed)),
        # grid-less: full-array VMEM blocks, no double-buffer machinery needed.
    )(x_pad, ctx, packed["w_ctx"], packed["b_ctx"],
      packed["w_up"], packed["w_down"], packed["w_mid"])

    x10 = out[:, :out_f]
    x01 = out[:, p_out:p_out + in_f]
    return x10, x01


# --------------------------- parameter construction --------------------------

def _init_linear(key, fan_in, fan_out):
    """nn.Linear-style init: W, b ~ U(-1/sqrt(fan_in), +1/sqrt(fan_in))."""
    bound = float(fan_in) ** -0.5
    kw, kb = jax.random.split(key)
    w = jax.random.uniform(kw, (fan_in, fan_out), jnp.float32, -bound, bound)
    b = jax.random.uniform(kb, (1, fan_out), jnp.float32, -bound, bound)
    return w, b


def init_trans_aoa_raw(key, input_size, output_size, ctx_size, num_layers=1):
    """Raw (unpacked, f32) params of one TransAoA stack."""
    layers = []
    d_in = input_size
    for _ in range(num_layers):
        key, kx, kc, ki, kci, kg, kcg = jax.random.split(key, 7)
        wx, bh = _init_linear(kx, d_in, output_size)
        wc, _ = _init_linear(kc, ctx_size, output_size)
        wi, bi = _init_linear(ki, output_size, output_size)
        wci, _ = _init_linear(kci, ctx_size, output_size)
        wg, bg = _init_linear(kg, output_size, output_size)
        wcg, _ = _init_linear(kcg, ctx_size, output_size)
        layers.append(dict(wx=wx, bh=bh, wc=wc, wi=wi, bi=bi, wci=wci,
                           wg=wg, bg=bg, wcg=wcg))
        d_in = output_size
    return layers


def init_up_triangle_raw(key, in_features, out_features, ctx_size, num_layers=1):
    k_up, k_down, k_mid = jax.random.split(key, 3)
    return dict(
        up=init_trans_aoa_raw(k_up, in_features, out_features, ctx_size, num_layers),
        down=init_trans_aoa_raw(k_down, out_features, in_features, ctx_size, num_layers),
        mid=init_trans_aoa_raw(k_mid, in_features * 2, in_features, ctx_size, num_layers),
    )


def pack_up_triangle(raw, in_features, out_features, ctx_size,
                     weight_dtype=jnp.bfloat16):
    """Pack raw params into tile-padded, coalesced slabs + static index metadata."""
    p_in, p_out = _pad128(in_features), _pad128(out_features)

    # First-layer input lane layout per stack: (src_row_start, n_rows, block_width)
    first_segments = {
        "up": [(0, in_features, p_in)],
        "down": [(0, out_features, p_out)],
        # mid consumes [x00_block(P_in lanes) | x10_down_block(P_in lanes)]
        "mid": [(0, in_features, p_in), (in_features, in_features, p_in)],
    }

    ctx_w_blocks, ctx_b_blocks = [], []
    ctx_col = 0
    stack_bufs = {}
    stacks_meta = []

    for name in ("up", "down", "mid"):
        segments = first_segments[name]
        blocks = []   # (col_offset, padded_block)
        col = 0
        meta = []
        for layer in raw[name]:
            wx, wc, bh = layer["wx"], layer["wc"], layer["bh"]
            wi, wci, bi = layer["wi"], layer["wci"], layer["bi"]
            wg, wcg, bg = layer["wg"], layer["wcg"], layer["bg"]
            d_out = wx.shape[1]
            p = _pad128(d_out)

            # --- Wx with rows placed to match the padded lane layout of input
            rows_x = sum(s[2] for s in segments)
            wx_pad = jnp.zeros((rows_x, p), jnp.float32)
            roff = 0
            for (src, n, width) in segments:
                wx_pad = wx_pad.at[roff:roff + n, :d_out].set(wx[src:src + n, :])
                roff += width

            # --- [Wi | Wg], each in its own 128-lane tile
            wig_pad = jnp.zeros((p, 2 * p), jnp.float32)
            wig_pad = wig_pad.at[:d_out, :d_out].set(wi)
            wig_pad = wig_pad.at[:d_out, p:p + d_out].set(wg)

            blocks.append((col, wx_pad))
            blocks.append((col + p, wig_pad))
            meta.append((int(rows_x), int(p), int(col), int(col + p), int(ctx_col)))
            col += 3 * p

            # --- ctx projections [Wc | Wci | Wcg] + fused biases [bh | bi | bg]
            cw = jnp.zeros((ctx_size, 3 * p), jnp.float32)
            cw = cw.at[:, :d_out].set(wc)
            cw = cw.at[:, p:p + d_out].set(wci)
            cw = cw.at[:, 2 * p:2 * p + d_out].set(wcg)
            cb = jnp.zeros((1, 3 * p), jnp.float32)
            cb = cb.at[:, :d_out].set(bh)
            cb = cb.at[:, p:p + d_out].set(bi)
            cb = cb.at[:, 2 * p:2 * p + d_out].set(bg)
            ctx_w_blocks.append(cw)
            ctx_b_blocks.append(cb)
            ctx_col += 3 * p

            segments = [(0, int(d_out), int(p))]   # next layer eats this output

        r_stack = max(max(b.shape[0] for _, b in blocks), 8)
        buf = jnp.zeros((r_stack, col), jnp.float32)
        for c0, b in blocks:
            buf = buf.at[:b.shape[0], c0:c0 + b.shape[1]].set(b)
        stack_bufs[name] = buf.astype(weight_dtype)
        stacks_meta.append(tuple(meta))

    packed = dict(
        w_ctx=jnp.concatenate(ctx_w_blocks, axis=1).astype(weight_dtype),
        b_ctx=jnp.concatenate(ctx_b_blocks, axis=1),
        w_up=stack_bufs["up"],
        w_down=stack_bufs["down"],
        w_mid=stack_bufs["mid"],
    )
    meta = (int(in_features), int(out_features), int(p_in), int(p_out),
            tuple(stacks_meta))
    return packed, meta


# -------------------------- plain-JAX reference (check) ----------------------
# Same math as the kernel: bf16 weights/activations into the MXU dots, f32
# accumulation, f32 elementwise.  (Not bit-faithful to an all-f32 PyTorch
# module -- bf16 weight storage is intentional.)

def _aoa_stack_ref(layers, h, c):
    cb = c.astype(jnp.bfloat16)
    bf = jnp.bfloat16
    f32 = jnp.float32
    for p in layers:
        hb = h.astype(bf)
        pre = (jnp.dot(hb, p["wx"].astype(bf), preferred_element_type=f32)
               + jnp.dot(cb, p["wc"].astype(bf), preferred_element_type=f32)
               + p["bh"])
        hh = jnp.tanh(pre)
        hhb = hh.astype(bf)
        info = (jnp.dot(hhb, p["wi"].astype(bf), preferred_element_type=f32)
                + jnp.dot(cb, p["wci"].astype(bf), preferred_element_type=f32)
                + p["bi"])
        gate = jax.nn.sigmoid(
            jnp.dot(hhb, p["wg"].astype(bf), preferred_element_type=f32)
            + jnp.dot(cb, p["wcg"].astype(bf), preferred_element_type=f32)
            + p["bg"])
        h = info * gate
    return h


def up_triangle_reference(raw, x, ctx):
    x10 = _aoa_stack_ref(raw["up"], x, ctx)
    x10_down = _aoa_stack_ref(raw["down"], x10, ctx)
    x01 = _aoa_stack_ref(raw["mid"],
                         jnp.concatenate([x, x10_down], axis=1), ctx)
    return x10, x01


# ----------------------------------- main ------------------------------------

if __name__ == "__main__":
    batch = 8
    in_features = 32
    out_features = 64
    ctx_size = 32
    num_layers = 1

    root = jax.random.PRNGKey(0)
    k_param, k_x, k_ctx = jax.random.split(root, 3)

    raw = init_up_triangle_raw(k_param, in_features, out_features,
                               ctx_size, num_layers)
    packed, meta = pack_up_triangle(raw, in_features, out_features, ctx_size)

    x = jax.random.normal(k_x, (batch, in_features), jnp.float32)
    ctx = jax.random.normal(k_ctx, (batch, ctx_size), jnp.float32)

    x_10, x_01 = up_triangle_forward(packed, x, ctx, meta=meta)
    jax.block_until_ready((x_10, x_01))

    assert x_10.shape == (batch, out_features)
    assert x_01.shape == (batch, in_features)

    # Numerical check against identical math in plain JAX.
    r_10, r_01 = up_triangle_reference(raw, x, ctx)
    assert jnp.allclose(x_10, r_10, atol=1e-2, rtol=1e-2)
    assert jnp.allclose(x_01, r_01, atol=1e-2, rtol=1e-2)

    print("KERNEL_OK")
</pallas_src>

<mosaic_0001>
module attributes {stable_mosaic.version = 11 : i64} {
  func.func @kernel(%arg0: memref<8x128xf32, #tpu.memory_space<vmem>>, %arg1: memref<8x32xf32, #tpu.memory_space<vmem>>, %arg2: memref<32x1152xbf16, #tpu.memory_space<vmem>>, %arg3: memref<1x1152xf32, #tpu.memory_space<vmem>>, %arg4: memref<128x384xbf16, #tpu.memory_space<vmem>>, %arg5: memref<128x384xbf16, #tpu.memory_space<vmem>>, %arg6: memref<256x384xbf16, #tpu.memory_space<vmem>>, %arg7: memref<8x256xf32, #tpu.memory_space<vmem>>) attributes {dimension_semantics = [], scalar_prefetch = 0 : i64, scratch_operands = 0 : i64, tpu.core_type = #tpu.core_type<tc>} {
    %c0 = arith.constant 0 : index
    %c0_0 = arith.constant 0 : index
    %0 = vector.load %arg0[%c0, %c0_0] : memref<8x128xf32, #tpu.memory_space<vmem>>, vector<8x128xf32>
    %c0_1 = arith.constant 0 : index
    %c0_2 = arith.constant 0 : index
    %1 = vector.load %arg1[%c0_1, %c0_2] : memref<8x32xf32, #tpu.memory_space<vmem>>, vector<8x32xf32>
    %2 = arith.truncf %1 : vector<8x32xf32> to vector<8x32xbf16>
    %c0_3 = arith.constant 0 : index
    %c0_4 = arith.constant 0 : index
    %3 = vector.load %arg2[%c0_3, %c0_4] : memref<32x1152xbf16, #tpu.memory_space<vmem>>, vector<32x1152xbf16>
    %cst = arith.constant dense<0.000000e+00> : vector<8x1152xf32>
    %4 = tpu.matmul %2, %3, %cst {dimension_numbers = #tpu.dot_dimension_numbers<[1], [0], [0], [1], [0, 0, 1, 1], [], []>} : vector<8x32xbf16>, vector<32x1152xbf16>, vector<8x1152xf32> -> vector<8x1152xf32>
    %c0_5 = arith.constant 0 : index
    %c0_6 = arith.constant 0 : index
    %5 = vector.load %arg3[%c0_5, %c0_6] : memref<1x1152xf32, #tpu.memory_space<vmem>>, vector<1x1152xf32>
    %6 = vector.broadcast %5 : vector<1x1152xf32> to vector<8x1152xf32>
    %7 = arith.addf %4, %6 : vector<8x1152xf32>
    %c0_7 = arith.constant 0 : index
    %c0_8 = arith.constant 0 : index
    %8 = vector.load %arg4[%c0_7, %c0_8] : memref<128x384xbf16, #tpu.memory_space<vmem>>, vector<128x128xbf16>
    %c0_9 = arith.constant 0 : index
    %c128 = arith.constant 128 : index
    %9 = vector.load %arg4[%c0_9, %c128] : memref<128x384xbf16, #tpu.memory_space<vmem>>, vector<128x256xbf16>
    %10 = arith.truncf %0 : vector<8x128xf32> to vector<8x128xbf16>
    %cst_10 = arith.constant dense<0.000000e+00> : vector<8x128xf32>
    %11 = tpu.matmul %10, %8, %cst_10 {dimension_numbers = #tpu.dot_dimension_numbers<[1], [0], [0], [1], [0, 0, 1, 1], [], []>} : vector<8x128xbf16>, vector<128x128xbf16>, vector<8x128xf32> -> vector<8x128xf32>
    %12 = vector.extract_strided_slice %7 {offsets = [0, 0], sizes = [8, 128], strides = [1, 1]} : vector<8x1152xf32> to vector<8x128xf32>
    %13 = arith.addf %11, %12 : vector<8x128xf32>
    %14 = math.tanh %13 : vector<8x128xf32>
    %15 = arith.truncf %14 : vector<8x128xf32> to vector<8x128xbf16>
    %cst_11 = arith.constant dense<0.000000e+00> : vector<8x256xf32>
    %16 = tpu.matmul %15, %9, %cst_11 {dimension_numbers = #tpu.dot_dimension_numbers<[1], [0], [0], [1], [0, 0, 1, 1], [], []>} : vector<8x128xbf16>, vector<128x256xbf16>, vector<8x256xf32> -> vector<8x256xf32>
    %17 = vector.extract_strided_slice %7 {offsets = [0, 128], sizes = [8, 256], strides = [1, 1]} : vector<8x1152xf32> to vector<8x256xf32>
    %18 = arith.addf %16, %17 : vector<8x256xf32>
    %19 = vector.extract_strided_slice %18 {offsets = [0, 0], sizes = [8, 128], strides = [1, 1]} : vector<8x256xf32> to vector<8x128xf32>
    %20 = vector.extract_strided_slice %18 {offsets = [0, 128], sizes = [8, 128], strides = [1, 1]} : vector<8x256xf32> to vector<8x128xf32>
    %21 = arith.negf %20 : vector<8x128xf32>
    %22 = math.exp %21 : vector<8x128xf32>
    %cst_12 = arith.constant 1.000000e+00 : f32
    %23 = vector.broadcast %cst_12 : f32 to vector<8x128xf32>
    %24 = arith.addf %23, %22 : vector<8x128xf32>
    %25 = arith.divf %23, %24 : vector<8x128xf32>
    %26 = arith.mulf %19, %25 : vector<8x128xf32>
    %c0_13 = arith.constant 0 : index
    %c0_14 = arith.constant 0 : index
    %27 = vector.load %arg5[%c0_13, %c0_14] : memref<128x384xbf16, #tpu.memory_space<vmem>>, vector<128x128xbf16>
    %c0_15 = arith.constant 0 : index
    %c128_16 = arith.constant 128 : index
    %28 = vector.load %arg5[%c0_15, %c128_16] : memref<128x384xbf16, #tpu.memory_space<vmem>>, vector<128x256xbf16>
    %29 = arith.truncf %26 : vector<8x128xf32> to vector<8x128xbf16>
    %cst_17 = arith.constant dense<0.000000e+00> : vector<8x128xf32>
    %30 = tpu.matmul %29, %27, %cst_17 {dimension_numbers = #tpu.dot_dimension_numbers<[1], [0], [0], [1], [0, 0, 1, 1], [], []>} : vector<8x128xbf16>, vector<128x128xbf16>, vector<8x128xf32> -> vector<8x128xf32>
    %31 = vector.extract_strided_slice %7 {offsets = [0, 384], sizes = [8, 128], strides = [1, 1]} : vector<8x1152xf32> to vector<8x128xf32>
    %32 = arith.addf %30, %31 : vector<8x128xf32>
    %33 = math.tanh %32 : vector<8x128xf32>
    %34 = arith.truncf %33 : vector<8x128xf32> to vector<8x128xbf16>
    %cst_18 = arith.constant dense<0.000000e+00> : vector<8x256xf32>
    %35 = tpu.matmul %34, %28, %cst_18 {dimension_numbers = #tpu.dot_dimension_numbers<[1], [0], [0], [1], [0, 0, 1, 1], [], []>} : vector<8x128xbf16>, vector<128x256xbf16>, vector<8x256xf32> -> vector<8x256xf32>
    %36 = vector.extract_strided_slice %7 {offsets = [0, 512], sizes = [8, 256], strides = [1, 1]} : vector<8x1152xf32> to vector<8x256xf32>
    %37 = arith.addf %35, %36 : vector<8x256xf32>
    %38 = vector.extract_strided_slice %37 {offsets = [0, 0], sizes = [8, 128], strides = [1, 1]} : vector<8x256xf32> to vector<8x128xf32>
    %39 = vector.extract_strided_slice %37 {offsets = [0, 128], sizes = [8, 128], strides = [1, 1]} : vector<8x256xf32> to vector<8x128xf32>
    %40 = arith.negf %39 : vector<8x128xf32>
    %41 = math.exp %40 : vector<8x128xf32>
    %cst_19 = arith.constant 1.000000e+00 : f32
    %42 = vector.broadcast %cst_19 : f32 to vector<8x128xf32>
    %43 = arith.addf %42, %41 : vector<8x128xf32>
    %44 = arith.divf %42, %43 : vector<8x128xf32>
    %45 = arith.mulf %38, %44 : vector<8x128xf32>
    %46 = tpu.concatenate %0, %45 in 1 : vector<8x128xf32>, vector<8x128xf32> -> vector<8x256xf32>
    %c0_20 = arith.constant 0 : index
    %c0_21 = arith.constant 0 : index
    %47 = vector.load %arg6[%c0_20, %c0_21] : memref<256x384xbf16, #tpu.memory_space<vmem>>, vector<256x128xbf16>
    %c0_22 = arith.constant 0 : index
    %c128_23 = arith.constant 128 : index
    %48 = vector.load %arg6[%c0_22, %c128_23] : memref<256x384xbf16, #tpu.memory_space<vmem>>, vector<128x256xbf16>
    %49 = arith.truncf %46 : vector<8x256xf32> to vector<8x256xbf16>
    %cst_24 = arith.constant dense<0.000000e+00> : vector<8x128xf32>
    %50 = tpu.matmul %49, %47, %cst_24 {dimension_numbers = #tpu.dot_dimension_numbers<[1], [0], [0], [1], [0, 0, 1, 1], [], []>} : vector<8x256xbf16>, vector<256x128xbf16>, vector<8x128xf32> -> vector<8x128xf32>
    %51 = vector.extract_strided_slice %7 {offsets = [0, 768], sizes = [8, 128], strides = [1, 1]} : vector<8x1152xf32> to vector<8x128xf32>
    %52 = arith.addf %50, %51 : vector<8x128xf32>
    %53 = math.tanh %52 : vector<8x128xf32>
    %54 = arith.truncf %53 : vector<8x128xf32> to vector<8x128xbf16>
    %cst_25 = arith.constant dense<0.000000e+00> : vector<8x256xf32>
    %55 = tpu.matmul %54, %48, %cst_25 {dimension_numbers = #tpu.dot_dimension_numbers<[1], [0], [0], [1], [0, 0, 1, 1], [], []>} : vector<8x128xbf16>, vector<128x256xbf16>, vector<8x256xf32> -> vector<8x256xf32>
    %56 = vector.extract_strided_slice %7 {offsets = [0, 896], sizes = [8, 256], strides = [1, 1]} : vector<8x1152xf32> to vector<8x256xf32>
    %57 = arith.addf %55, %56 : vector<8x256xf32>
    %58 = vector.extract_strided_slice %57 {offsets = [0, 0], sizes = [8, 128], strides = [1, 1]} : vector<8x256xf32> to vector<8x128xf32>
    %59 = vector.extract_strided_slice %57 {offsets = [0, 128], sizes = [8, 128], strides = [1, 1]} : vector<8x256xf32> to vector<8x128xf32>
    %60 = arith.negf %59 : vector<8x128xf32>
    %61 = math.exp %60 : vector<8x128xf32>
    %cst_26 = arith.constant 1.000000e+00 : f32
    %62 = vector.broadcast %cst_26 : f32 to vector<8x128xf32>
    %63 = arith.addf %62, %61 : vector<8x128xf32>
    %64 = arith.divf %62, %63 : vector<8x128xf32>
    %65 = arith.mulf %58, %64 : vector<8x128xf32>
    %66 = tpu.concatenate %26, %65 in 1 : vector<8x128xf32>, vector<8x128xf32> -> vector<8x256xf32>
    %c0_27 = arith.constant 0 : index
    %c0_28 = arith.constant 0 : index
    %67 = vector.load %arg7[%c0_27, %c0_28] : memref<8x256xf32, #tpu.memory_space<vmem>>, vector<8x256xf32>
    tpu.vector_store %arg7[%c0_27, %c0_28], %66 {strides = array<i32>} : memref<8x256xf32, #tpu.memory_space<vmem>>, vector<8x256xf32>,
    return
  }
}

</mosaic_0001>

<bundles_post_ra>
// kernel: up_triangle_forward.1
= control target key start
LH: loop header
LB: loop body
LE: loop exit
PB: predicated region body
PF: predicated region fallthrough
CT: control target
= control target key end

     0   :  { %12 = vsyncpa [#allocation3], 0  ;;  %s1870_s0 = inlined_call_operand.vmem [shape: f32[8,128], index: 0, kind: input, shape index: {}]   ;;  %s1871_s1 = inlined_call_operand.vmem [shape: f32[8,32], index: 1, kind: input, shape index: {}]   ;;  %s1872_s2 = inlined_call_operand.hbm [shape: bf16[32,1152], index: 2, kind: input, shape index: {}]   ;;  %s1873_s3 = inlined_call_operand.vmem [shape: f32[1,1152], index: 3, kind: input, shape index: {}]   ;;  %s1874_s4 = inlined_call_operand.hbm [shape: bf16[128,384], index: 4, kind: input, shape index: {}]   ;;  %s1875_s5 = inlined_call_operand.hbm [shape: bf16[128,384], index: 5, kind: input, shape index: {}]   ;;  %s1876_s6 = inlined_call_operand.hbm [shape: bf16[256,384], index: 6, kind: input, shape index: {}]   ;;  %s1877_s7 = inlined_call_operand.vmem [shape: f32[8,256], index: 7, kind: output, shape index: {}]  }
   0x1   :  { %13 = vsyncpa [#allocation5], 0  ;;  %s38_s26 = sshll.u32 %s1874_s4, 4  ;;  %s39_s26 = int_to_ptr.hbm [resolvable:$true] %s38_s26 }
   0x2   :  { %14 = vsyncpa [#allocation8], 0  ;;  %s1731_s27 = smov [#allocation4]   ;;  %s23_s8 = sshll.u32 %s1872_s2, 4  ;;  %s24_s8 = int_to_ptr.hbm [resolvable:$true] %s23_s8 }
   0x3   :  { %s40_s28 = sshll.u32 %s1731_s27, 4  ;;  %s1732_s9 = smov 192   ;;  %s41_s28 = int_to_ptr.vmem [resolvable:$true] %s40_s28 }
   0x4   :  { %s1733_s10 = smov 12   ;;  %s1734_s11 = smov [#allocation2]  }
   0x5   :  { %46 = dma.hbm_to_vmem [thread:$0]  %s39_s26, 3072, %s41_s28, [#allocation5], %s1732_s9, %s1732_s9, %s1733_s10  }
   0x6   :  { %s25_s12 = sshll.u32 %s1734_s11, 4  ;;  %s1735_s13 = smov 576   ;;  %s26_s12 = int_to_ptr.vmem [resolvable:$true] %s25_s12 }
   0x7   :  { %s1736_s14 = smov 36   ;;  %s51_s16 = sshll.u32 %s1875_s5, 4  ;;  %s52_s16 = int_to_ptr.hbm [resolvable:$true] %s51_s16 }
   0x8   :  { %31 = dma.hbm_to_vmem [thread:$0]  %s24_s8, 2304, %s26_s12, [#allocation3], %s1735_s13, %s1735_s13, %s1736_s14  }
   0x9   :  { %s1737_s17 = smov [#allocation6]   ;;  %s64_s20 = sshll.u32 %s1876_s6, 4  ;;  %s65_s20 = int_to_ptr.hbm [resolvable:$true] %s64_s20 }
   0xa   :  { %s53_s18 = sshll.u32 %s1737_s17, 4  ;;  %s1738_s21 = smov [#allocation7]   ;;  %s54_s18 = int_to_ptr.vmem [resolvable:$true] %s53_s18 }
   0xb   :  { %59 = dma.hbm_to_vmem [thread:$0]  %s52_s16, 3072, %s54_s18, [#allocation5], %s1732_s9, %s1732_s9, %s1733_s10  }
   0xc   :  { %s66_s22 = sshll.u32 %s1738_s21, 4  ;;  %s67_s22 = int_to_ptr.vmem [resolvable:$true] %s66_s22 }
   0xd   :  { %72 = dma.hbm_to_vmem [thread:$0]  %s65_s20, 6144, %s67_s22, [#allocation8], %s1732_s9, %s1732_s9, %s1733_s10  }
   0xe   :  { %1725 = dma.done.wait [#allocation3], 2304  }
   0xf   :  { %1726 = vsyncadd [#allocation3], 4294964992 }
  0x10   :  { %1727 = dma.done.wait [#allocation5], 6144  }
  0x11   :  { %1728 = vsyncadd [#allocation5], 4294961152 }
  0x12   :  { %1729 = dma.done.wait [#allocation8], 6144  }
  0x13   :  { %1730 = vsyncadd [#allocation8], 4294961152  ;;  %v1515_v0 = vld [vmem:[#allocation2 + $0x5c] sm:$0xf]  ;;  %v1156_v1 = vld [vmem:[#allocation2 + $0x7c] sm:$0xf0] }
  0x14   :  { %v1506_v2 = vld [vmem:[#allocation2 + $0x14] sm:$0xf]  ;;  %v1159_v3 = vor.u32 %v1515_v0, %v1156_v1  ;;  %v1120_v4 = vld [vmem:[#allocation2 + $0x34] sm:$0xf0]  ;;  %v1529_v6 = vld [vmem:[#allocation4 + $0xb0] sm:$0xf0] }
  0x15   :  { %v1211_v5 = vld [vmem:[#allocation4 + $0xa8] sm:$0xf]  ;;  %v1123_v7 = vor.u32 %v1506_v2, %v1120_v4  ;;  %v91_v8 = vld [vmem:[%s1871_s1] sm:$0xff]  ;;  %v1138_v10 = vld [vmem:[#allocation2 + $0x48] sm:$0xf]  ;;  %vm227_vm0 = vcmask 261120  }
  0x16   :  { %302 = vmatpush.bf16.msra.mxu1 %v1159_v3  ;;  %v1212_v9 = vor.u32 %v1529_v6, %v1211_v5  ;;  %v1517_v11 = vld [vmem:[#allocation2 + $0x68] sm:$0xf0]  ;;  %v1207_v12 = vld [vmem:[#allocation4 + $0x90] sm:$0xf]  ;;  %v1794_v16 = vpack.c.bf16 %v91_v8, %v91_v8  ;;  %v1508_v17 = vld [vmem:[#allocation2 + $0x20] sm:$0xf0] }
  0x17   :  { %v1528_v13 = vld [vmem:[#allocation4 + $0x98] sm:$0xf0]  ;;  %v1139_v14 = vor.u32 %v1517_v11, %v1138_v10  ;;  %v1102_v15 = vld [vmem:[#allocation2] sm:$0xf]  ;;  %v1203_v20 = vld [vmem:[#allocation4 + $0x78] sm:$0xf] }
  0x18   :  { %v1103_v18 = vor.u32 %v1508_v17, %v1102_v15  ;;  %v1208_v19 = vor.u32 %v1528_v13, %v1207_v12  ;;  %v1527_v21 = vld [vmem:[#allocation4 + $0x80] sm:$0xf0]  ;;  %v1513_v22 = vld [vmem:[#allocation2 + $0x4c] sm:$0xf]  ;;  %v1140_v23 = vld [vmem:[#allocation2 + $0x6c] sm:$0xf0] }
  0x19   :  { %237 = vmatpush.bf16.msra.mxu0 %v1139_v14  ;;  %v1504_v24 = vld [vmem:[#allocation2 + $0x4] sm:$0xf]  ;;  %v1104_v25 = vld [vmem:[#allocation2 + $0x24] sm:$0xf0]  ;;  %v1143_v26 = vor.u32 %v1513_v22, %v1140_v23  ;;  %v1514_v27 = vld [vmem:[#allocation2 + $0x54] sm:$0xf]  ;;  %v1204_v29 = vor.u32 %v1527_v21, %v1203_v20 }
  0x1a   :  { %303 = vmatpush.bf16.msra.mxu1 %v1123_v7  ;;  %v1148_v28 = vld [vmem:[#allocation2 + $0x74] sm:$0xf0]  ;;  %v1199_v30 = vld [vmem:[#allocation4 + $0x60] sm:$0xf]  ;;  %v1526_v31 = vld [vmem:[#allocation4 + $0x68] sm:$0xf0]  ;;  %v1107_v32 = vor.u32 %v1504_v24, %v1104_v25 }
  0x1b   :  { %250 = vmatpush.bf16.msra.mxu3 %v1143_v26  ;;  %v1151_v33 = vor.u32 %v1514_v27, %v1148_v28  ;;  %v1505_v34 = vld [vmem:[#allocation2 + $0xc] sm:$0xf]  ;;  %v1146_v35 = vld [vmem:[#allocation2 + $0x50] sm:$0xf]  ;;  %v1518_v36 = vld [vmem:[#allocation2 + $0x70] sm:$0xf0]  ;;  %v1200_v43 = vor.u32 %v1526_v31, %v1199_v30 }
  0x1c   :  { %v1112_v37 = vld [vmem:[#allocation2 + $0x2c] sm:$0xf0]  ;;  %v1516_v38 = vld [vmem:[#allocation2 + $0x64] sm:$0xf]  ;;  %v1147_v39 = vor.u32 %v1518_v36, %v1146_v35  ;;  %v1110_v40 = vld [vmem:[#allocation2 + $0x8] sm:$0xf] }
  0x1d   :  { %1177 = vmatmul.msk.bf16.vlgmr.msra.gmra.mxu1 %vm227_vm0, %v1794_v16  ;;  %238 = vmatpush.bf16.msra.mxu0 %v1103_v18  ;;  %v1164_v41 = vld [vmem:[#allocation2 + $0x84] sm:$0xf0]  ;;  %v1509_v42 = vld [vmem:[#allocation2 + $0x28] sm:$0xf0]  ;;  %v1195_v44 = vld [vmem:[#allocation4 + $0x48] sm:$0xf]  ;;  %v1115_v46 = vor.u32 %v1505_v34, %v1112_v37 }
  0x1e   :  { %429 = vmatpush.bf16.msrb.mxu1 %v1212_v9  ;;  %v1525_v45 = vld [vmem:[#allocation4 + $0x50] sm:$0xf0]  ;;  %263 = vmatpush.bf16.msra.mxu2 %v1147_v39  ;;  %v1111_v47 = vor.u32 %v1509_v42, %v1110_v40  ;;  %v1167_v48 = vor.u32 %v1516_v38, %v1164_v41  ;;  %v1507_v49 = vld [vmem:[#allocation2 + $0x1c] sm:$0xf]  ;;  %v1128_v50 = vld [vmem:[#allocation2 + $0x3c] sm:$0xf0] }
  0x1f   :  { %251 = vmatpush.bf16.msra.mxu3 %v1107_v32  ;;  %v1196_v51 = vor.u32 %v1525_v45, %v1195_v44  ;;  %v1191_v52 = vld [vmem:[#allocation4 + $0x30] sm:$0xf]  ;;  %v1524_v53 = vld [vmem:[#allocation4 + $0x38] sm:$0xf0]  ;;  %v1131_v54 = vor.u32 %v1507_v49, %v1128_v50  ;;  %v1187_v56 = vld [vmem:[#allocation4 + $0x18] sm:$0xf] }
  0x20   :  { %1172 = vmatmul.msk.bf16.vlgmr.msra.gmra.mxu0 %vm227_vm0, %v1794_v16  ;;  %v1192_v55 = vor.u32 %v1524_v53, %v1191_v52  ;;  %v1523_v57 = vld [vmem:[#allocation4 + $0x20] sm:$0xf0]  ;;  %v1183_v59 = vld [vmem:[#allocation4] sm:$0xf]  ;;  %v1522_v60 = vld [vmem:[#allocation4 + $0x8] sm:$0xf0] }
  0x21   :  { %v1188_v58 = vor.u32 %v1523_v57, %v1187_v56  ;;  %v1544_v61 = vld [vmem:[#allocation4 + $0xb0] sm:$0xf]  ;;  %v1273_v62 = vld [vmem:[#allocation4 + $0xb8] sm:$0xf0]  ;;  %v1184_v63 = vor.u32 %v1522_v60, %v1183_v59  ;;  %v1542_v2 = vld [vmem:[#allocation4 + $0x98] sm:$0xf] }
  0x22   :  { %430 = vmatpush.bf16.msrb.mxu1 %v1208_v19  ;;  %1173 = vmatmul.msk.bf16.vlgmr.msra.gmra.mxu3 %vm227_vm0, %v1794_v16  ;;  %v90_v0 = vld [vmem:[%s1870_s0] sm:$0xff]  ;;  %v1276_v1 = vor.u32 %v1544_v61, %v1273_v62  ;;  %v1265_v3 = vld [vmem:[#allocation4 + $0xa0] sm:$0xf0]  ;;  %v1540_v8 = vld [vmem:[#allocation4 + $0x80] sm:$0xf] }
  0x23   :  { %276 = vmatpush.bf16.msrb.mxu3 %v1151_v33  ;;  %264 = vmatpush.bf16.msra.mxu2 %v1111_v47  ;;  %v1807_v4 = vpack.c.bf16 %v90_v0, %v90_v0  ;;  %v1268_v5 = vor.u32 %v1542_v2, %v1265_v3  ;;  %v1162_v6 = vld [vmem:[#allocation2 + $0x60] sm:$0xf]  ;;  %v1520_v7 = vld [vmem:[#allocation2 + $0x80] sm:$0xf0]  ;;  %v1257_v10 = vld [vmem:[#allocation4 + $0x88] sm:$0xf0] }
  0x24   :  { %v1163_v9 = vor.u32 %v1520_v7, %v1162_v6  ;;  %v1126_v11 = vld [vmem:[#allocation2 + $0x18] sm:$0xf]  ;;  %v1511_v12 = vld [vmem:[#allocation2 + $0x38] sm:$0xf0]  ;;  %v1260_v13 = vor.u32 %v1540_v8, %v1257_v10  ;;  %v1249_v15 = vld [vmem:[#allocation4 + $0x70] sm:$0xf0] }
  0x25   :  { %v1538_v14 = vld [vmem:[#allocation4 + $0x68] sm:$0xf]  ;;  %v1271_v17 = vld [vmem:[#allocation4 + $0xac] sm:$0xf]  ;;  %v1127_v18 = vor.u32 %v1511_v12, %v1126_v11  ;;  %v1545_v19 = vld [vmem:[#allocation4 + $0xb4] sm:$0xf0] }
  0x26   :  { %431 = vmatpush.bf16.msrb.mxu1 %v1204_v29  ;;  %1174 = vmatmul.msk.bf16.vlgmr.msra.gmra.mxu2 %vm227_vm0, %v1794_v16  ;;  %v1252_v20 = vor.u32 %v1538_v14, %v1249_v15  ;;  %v1272_v21 = vor.u32 %v1545_v19, %v1271_v17  ;;  %v1536_v22 = vld [vmem:[#allocation4 + $0x50] sm:$0xf]  ;;  %v1241_v23 = vld [vmem:[#allocation4 + $0x58] sm:$0xf0]  ;;  %v1263_v24 = vld [vmem:[#allocation4 + $0x94] sm:$0xf] }
  0x27   :  { %277 = vmatpush.bf16.msrb.mxu3 %v1115_v46  ;;  %315 = vmatpush.bf16.msrb.mxu2 %v1163_v9  ;;  %v1244_v25 = vor.u32 %v1536_v22, %v1241_v23  ;;  %v1543_v26 = vld [vmem:[#allocation4 + $0x9c] sm:$0xf0]  ;;  %v1534_v27 = vld [vmem:[#allocation4 + $0x38] sm:$0xf]  ;;  %v1233_v29 = vld [vmem:[#allocation4 + $0x40] sm:$0xf0] }
  0x28   :  { %v1264_v28 = vor.u32 %v1543_v26, %v1263_v24  ;;  %v1255_v30 = vld [vmem:[#allocation4 + $0x7c] sm:$0xf]  ;;  %v1541_v31 = vld [vmem:[#allocation4 + $0x84] sm:$0xf0]  ;;  %v1236_v32 = vor.u32 %v1534_v27, %v1233_v29  ;;  %v1532_v34 = vld [vmem:[#allocation4 + $0x20] sm:$0xf] }
  0x29   :  { %v1256_v33 = vor.u32 %v1541_v31, %v1255_v30  ;;  %v1225_v35 = vld [vmem:[#allocation4 + $0x28] sm:$0xf0]  ;;  %v1247_v36 = vld [vmem:[#allocation4 + $0x64] sm:$0xf]  ;;  %v1539_v37 = vld [vmem:[#allocation4 + $0x6c] sm:$0xf0] }
  0x2a   :  { %432 = vmatpush.bf16.msrb.mxu1 %v1200_v43  ;;  %v1228_v38 = vor.u32 %v1532_v34, %v1225_v35  ;;  %v1248_v39 = vor.u32 %v1539_v37, %v1247_v36  ;;  %v1530_v40 = vld [vmem:[#allocation4 + $0x8] sm:$0xf]  ;;  %v1217_v41 = vld [vmem:[#allocation4 + $0x10] sm:$0xf0]  ;;  %v1239_v42 = vld [vmem:[#allocation4 + $0x4c] sm:$0xf] }
  0x2b   :  { %328 = vmatpush.bf16.msra.mxu3 %v1167_v48  ;;  %316 = vmatpush.bf16.msrb.mxu2 %v1127_v18  ;;  %v1537_v43 = vld [vmem:[#allocation4 + $0x54] sm:$0xf0]  ;;  %v1405_v44 = vld [vmem:[#allocation7 + $0xa8] sm:$0xf]  ;;  %v1577_v45 = vld [vmem:[#allocation7 + $0xb0] sm:$0xf0]  ;;  %v1220_v46 = vor.u32 %v1530_v40, %v1217_v41 }
  0x2c   :  { %v1240_v47 = vor.u32 %v1537_v43, %v1239_v42  ;;  %v1406_v48 = vor.u32 %v1577_v45, %v1405_v44  ;;  %v1231_v49 = vld [vmem:[#allocation4 + $0x34] sm:$0xf]  ;;  %v1535_v50 = vld [vmem:[#allocation4 + $0x3c] sm:$0xf0]  ;;  %v1576_v53 = vld [vmem:[#allocation7 + $0x98] sm:$0xf0] }
  0x2d   :  { %v1232_v52 = vor.u32 %v1535_v50, %v1231_v49  ;;  %v1533_v56 = vld [vmem:[#allocation4 + $0x24] sm:$0xf0]  ;;  %v1397_v57 = vld [vmem:[#allocation7 + $0x78] sm:$0xf]  ;;  %v1575_v60 = vld [vmem:[#allocation7 + $0x80] sm:$0xf0] }
  0x2e   :  { %433 = vmatpush.bf16.msrb.mxu1 %v1196_v51  ;;  %v1401_v51 = vld [vmem:[#allocation7 + $0x90] sm:$0xf]  ;;  %v1398_v61 = vor.u32 %v1575_v60, %v1397_v57  ;;  %v1215_v62 = vld [vmem:[#allocation4 + $0x4] sm:$0xf]  ;;  %v1393_v0 = vld [vmem:[#allocation7 + $0x60] sm:$0xf] }
  0x2f   :  { %329 = vmatpush.bf16.msra.mxu3 %v1131_v54  ;;  %524 = vmatpush.bf16.msra.mxu2 %v1272_v21  ;;  %v1402_v54 = vor.u32 %v1576_v53, %v1401_v51  ;;  %v1574_v3 = vld [vmem:[#allocation7 + $0x68] sm:$0xf0]  ;;  %v1389_v6 = vld [vmem:[#allocation7 + $0x48] sm:$0xf]  ;;  %v1573_v7 = vld [vmem:[#allocation7 + $0x50] sm:$0xf0] }
  0x30   :  { %v1390_v9 = vor.u32 %v1573_v7, %v1389_v6  ;;  %v1385_v10 = vld [vmem:[#allocation7 + $0x30] sm:$0xf]  ;;  %v1572_v11 = vld [vmem:[#allocation7 + $0x38] sm:$0xf0]  ;;  %v1381_v14 = vld [vmem:[#allocation7 + $0x18] sm:$0xf] }
  0x31   :  { %v1386_v12 = vor.u32 %v1572_v11, %v1385_v10  ;;  %v1571_v15 = vld [vmem:[#allocation7 + $0x20] sm:$0xf0]  ;;  %v1377_v18 = vld [vmem:[#allocation7] sm:$0xf]  ;;  %v1570_v19 = vld [vmem:[#allocation7 + $0x8] sm:$0xf0] }
  0x32   :  { %434 = vmatpush.bf16.msrb.mxu1 %v1192_v55  ;;  %1175 = vmatmul.msk.bf16.vlgmr.msrb.gmra.mxu3 %vm227_vm0, %v1794_v16  ;;  %v1223_v55 = vld [vmem:[#allocation4 + $0x1c] sm:$0xf]  ;;  %v1382_v17 = vor.u32 %v1571_v15, %v1381_v14  ;;  %v1821_v21 = vld [vmem:[%s1873_s3] sm:$0xff]  ;;  %v1154_v37 = vld [vmem:[#allocation2 + $0x58] sm:$0xf] }
  0x33   :  { %537 = vmatpush.bf16.msrb.mxu3 %v1276_v1  ;;  %525 = vmatpush.bf16.msra.mxu2 %v1264_v28  ;;  %v1224_v59 = vor.u32 %v1533_v56, %v1223_v55  ;;  %v117_v22 = vperm.slane %v1821_v21, 0  ;;  %v1510_v41 = vld [vmem:[#allocation2 + $0x30] sm:$0xf0]  ;;  %v1170_v43 = vld [vmem:[#allocation2 + $0x68] sm:$0xf]  ;;  %v119_v10 = vperm.slane %v1821_v21, 2 }
  0x34   :  { %v1521_v44 = vld [vmem:[#allocation2 + $0x88] sm:$0xf0]  ;;  %v1308_v50 = vld [vmem:[#allocation6 + $0xa8] sm:$0xf]  ;;  %v1553_v51 = vld [vmem:[#allocation6 + $0xb0] sm:$0xf0] }
  0x35   :  { %v1171_v45 = vor.u32 %v1521_v44, %v1170_v43  ;;  %v1304_v53 = vld [vmem:[#allocation6 + $0x90] sm:$0xf]  ;;  %v1300_v56 = vld [vmem:[#allocation6 + $0x78] sm:$0xf]  ;;  %v1551_v57 = vld [vmem:[#allocation6 + $0x80] sm:$0xf0] }
  0x36   :  { %435 = vmatpush.bf16.msrb.mxu1 %v1188_v58  ;;  %1178 = vmatmul.msk.bf16.vlgmr.msrb.gmra.mxu2 %vm227_vm0, %v1794_v16  ;;  %v1296_v60 = vld [vmem:[#allocation6 + $0x60] sm:$0xf]  ;;  %v1284_v6 = vld [vmem:[#allocation6 + $0x18] sm:$0xf]  ;;  %v1547_v7 = vld [vmem:[#allocation6 + $0x20] sm:$0xf0] }
  0x37   :  { %538 = vmatpush.bf16.msrb.mxu3 %v1268_v5  ;;  %526 = vmatpush.bf16.msra.mxu2 %v1256_v33  ;;  %v1394_v5 = vor.u32 %v1574_v3, %v1393_v0  ;;  %v1549_v0 = vld [vmem:[#allocation6 + $0x50] sm:$0xf0]  ;;  %v1548_v3 = vld [vmem:[#allocation6 + $0x38] sm:$0xf0] }
  0x3a   :  { %436 = vmatpush.bf16.msrb.mxu1 %v1184_v63  ;;  %v1531_v63 = vld [vmem:[#allocation4 + $0xc] sm:$0xf0] }
  0x3b   :  { %539 = vmatpush.bf16.msrb.mxu3 %v1260_v13  ;;  %527 = vmatpush.bf16.msra.mxu2 %v1248_v39  ;;  %v1216_v2 = vor.u32 %v1531_v63, %v1215_v62  ;;  %v1118_v39 = vld [vmem:[#allocation2 + $0x10] sm:$0xf]  ;;  %v1292_v63 = vld [vmem:[#allocation6 + $0x48] sm:$0xf] }
  0x3c   :  { %v1119_v42 = vor.u32 %v1510_v41, %v1118_v39 }
  0x3d   :  { %437 = vmatmul.bf16.vlgmr.msrb.gmra.mxu1 %v1807_v4 }
  0x3f   :  { %540 = vmatpush.bf16.msrb.mxu3 %v1252_v20  ;;  %528 = vmatpush.bf16.msra.mxu2 %v1240_v47  ;;  %v1378_v20 = vor.u32 %v1570_v19, %v1377_v18  ;;  %v1134_v47 = vld [vmem:[#allocation2 + $0x20] sm:$0xf] }
  0x42   :  { %1179 = vmatmul.msk.bf16.vlgmr.msra.gmra.mxu3 %vm227_vm0, %v1794_v16 }
  0x43   :  { %541 = vmatpush.bf16.msrb.mxu3 %v1244_v25  ;;  %529 = vmatpush.bf16.msra.mxu2 %v1232_v52  ;;  %v1309_v52 = vor.u32 %v1553_v51, %v1308_v50  ;;  %v1370_v50 = vld [vmem:[#allocation6 + $0xb8] sm:$0xf0] }
  0x47   :  { %542 = vmatpush.bf16.msrb.mxu3 %v1236_v32  ;;  %530 = vmatpush.bf16.msra.mxu2 %v1224_v59  ;;  %v1301_v59 = vor.u32 %v1551_v57, %v1300_v56  ;;  %v1362_v56 = vld [vmem:[#allocation6 + $0xa0] sm:$0xf0]  ;;  %v1352_v57 = vld [vmem:[#allocation6 + $0x7c] sm:$0xf] }
  0x4b   :  { %543 = vmatpush.bf16.msrb.mxu3 %v1228_v38  ;;  %531 = vmatpush.bf16.msra.mxu2 %v1216_v2  ;;  %v1519_v38 = vld [vmem:[#allocation2 + $0x78] sm:$0xf0]  ;;  %v1288_v2 = vld [vmem:[#allocation6 + $0x30] sm:$0xf] }
  0x4c   :  { %v1155_v40 = vor.u32 %v1519_v38, %v1154_v37 }
  0x4e   :  { %289 = vmatpush.bf16.msrb.mxu0 %v1155_v40 }
  0x4f   :  { %544 = vmatpush.bf16.msrb.mxu3 %v1220_v46 }
  0x52   :  { %290 = vmatpush.bf16.msrb.mxu0 %v1119_v42 }
  0x53   :  { %937 = vmatpush.bf16.msra.mxu3 %v1406_v48  ;;  %v1512_v48 = vld [vmem:[#allocation2 + $0x40] sm:$0xf0] }
  0x54   :  { %v1135_v49 = vor.u32 %v1512_v48, %v1134_v47  ;;  %v1368_v47 = vld [vmem:[#allocation6 + $0xac] sm:$0xf]  ;;  %v1568_v48 = vld [vmem:[#allocation6 + $0xb0] sm:$0xf] }
  0x55   :  { %1176 = vmatmul.msk.bf16.vlgmr.msrb.gmra.mxu0 %vm227_vm0, %v1794_v16  ;;  %v1373_v51 = vor.u32 %v1568_v48, %v1370_v50  ;;  %v1433_v48 = vld [vmem:[#allocation7 + $0x150] sm:$0xf] }
  0x56   :  { %341 = vmatpush.bf16.msra.mxu0 %v1171_v45 }
  0x57   :  { %938 = vmatpush.bf16.msra.mxu3 %v1402_v54  ;;  %v1552_v54 = vld [vmem:[#allocation6 + $0x98] sm:$0xf0]  ;;  %759 = vmatpush.bf16.msrb.mxu2 %v1373_v51  ;;  %v1429_v51 = vld [vmem:[#allocation7 + $0x138] sm:$0xf] }
  0x58   :  { %v1305_v55 = vor.u32 %v1552_v54, %v1304_v53  ;;  %v1567_v53 = vld [vmem:[#allocation6 + $0x9c] sm:$0xf0]  ;;  %v1566_v54 = vld [vmem:[#allocation6 + $0x98] sm:$0xf] }
  0x5a   :  { %342 = vmatpush.bf16.msra.mxu0 %v1135_v49 }
  0x5b   :  { %939 = vmatpush.bf16.msra.mxu3 %v1398_v61  ;;  %v1550_v61 = vld [vmem:[#allocation6 + $0x68] sm:$0xf0] }
  0x5c   :  { %v1297_v62 = vor.u32 %v1550_v61, %v1296_v60  ;;  %v1365_v60 = vor.u32 %v1566_v54, %v1362_v56  ;;  %v1564_v61 = vld [vmem:[#allocation6 + $0x80] sm:$0xf]  ;;  %v1582_v54 = vld [vmem:[#allocation7 + $0x128] sm:$0xf0]  ;;  %v1421_v56 = vld [vmem:[#allocation7 + $0x108] sm:$0xf] }
  0x5e   :  { %651 = vmatpush.bf16.msrb.mxu0 %v1309_v52  ;;  %v1360_v52 = vld [vmem:[#allocation6 + $0x94] sm:$0xf]  ;;  %760 = vmatpush.bf16.msrb.mxu2 %v1365_v60  ;;  %v1417_v60 = vld [vmem:[#allocation7 + $0xf0] sm:$0xf] }
  0x5f   :  { %940 = vmatpush.bf16.msra.mxu3 %v1394_v5  ;;  %v1289_v5 = vor.u32 %v1548_v3, %v1288_v2  ;;  %v1563_v2 = vld [vmem:[#allocation6 + $0x6c] sm:$0xf0]  ;;  %v1562_v3 = vld [vmem:[#allocation6 + $0x68] sm:$0xf] }
  0x62   :  { %652 = vmatpush.bf16.msrb.mxu0 %v1305_v55  ;;  %v1361_v55 = vor.u32 %v1567_v53, %v1360_v52  ;;  %v1583_v52 = vld [vmem:[#allocation7 + $0x140] sm:$0xf0] }
  0x63   :  { %941 = vmatpush.bf16.msra.mxu3 %v1390_v9  ;;  %v1546_v9 = vld [vmem:[#allocation6 + $0x8] sm:$0xf0]  ;;  %v1430_v53 = vor.u32 %v1583_v52, %v1429_v51  ;;  %v121_v52 = vperm.slane %v1821_v21, 4 }
  0x65   :  { %1180 = vmatmul.msk.bf16.vlgmr.msra.gmra.mxu0 %vm227_vm0, %v1794_v16  ;;  %v1280_v16 = vld [vmem:[#allocation6] sm:$0xf] }
  0x66   :  { %653 = vmatpush.bf16.msrb.mxu0 %v1301_v59  ;;  %v1281_v11 = vor.u32 %v1546_v9, %v1280_v16  ;;  %v1565_v59 = vld [vmem:[#allocation6 + $0x84] sm:$0xf0]  ;;  %v1336_v16 = vld [vmem:[#allocation6 + $0x4c] sm:$0xf]  ;;  %v1560_v9 = vld [vmem:[#allocation6 + $0x50] sm:$0xf] }
  0x67   :  { %942 = vmatpush.bf16.msra.mxu3 %v1386_v12 }
  0x6a   :  { %654 = vmatpush.bf16.msrb.mxu0 %v1297_v62  ;;  %v1354_v62 = vld [vmem:[#allocation6 + $0x88] sm:$0xf0] }
  0x6b   :  { %943 = vmatpush.bf16.msra.mxu3 %v1382_v17 }
  0x6f   :  { %944 = vmatpush.bf16.msra.mxu3 %v1378_v20 }
  0x9a   :  { %v1816_v58 = vpop.f32.mrf.mxu1 }
  0x9d   :  { %v240_v1 = vpop.f32.mrf.mxu0 }
  0x9e   :  { %v241_v25 = vadd.f32 %v240_v1, %v117_v22  ;;  %v1293_v1 = vor.u32 %v1549_v0, %v1292_v63  ;;  %v123_v22 = vperm.slane %v1821_v21, 6  ;;  %v1353_v63 = vor.u32 %v1565_v59, %v1352_v57  ;;  %v1581_v57 = vld [vmem:[#allocation7 + $0x110] sm:$0xf0] }
  0x9f   :  { %v1357_v0 = vor.u32 %v1564_v61, %v1354_v62  ;;  %v1422_v59 = vor.u32 %v1581_v57, %v1421_v56  ;;  %v1580_v61 = vld [vmem:[#allocation7 + $0xf8] sm:$0xf0] }
  0xa0   :  { %655 = vmatpush.bf16.msrb.mxu0 %v1293_v1  ;;  %v1344_v1 = vld [vmem:[#allocation6 + $0x64] sm:$0xf]  ;;  %v1418_v62 = vor.u32 %v1580_v61, %v1417_v60 }
  0xa1   :  { %761 = vmatpush.bf16.msrb.mxu2 %v1357_v0  ;;  %v1579_v0 = vld [vmem:[#allocation7 + $0xe0] sm:$0xf0] }
  0xa2   :  { %v307_v8 = vpop.f32.mrf.mxu1 }
  0xa3   :  { %v1285_v8 = vor.u32 %v1547_v7, %v1284_v6  ;;  %v1345_v6 = vor.u32 %v1563_v2, %v1344_v1  ;;  %v1409_v2 = vld [vmem:[#allocation7 + $0xc0] sm:$0xf] }
  0xa4   :  { %656 = vmatpush.bf16.msrb.mxu0 %v1289_v5  ;;  %v1346_v5 = vld [vmem:[#allocation6 + $0x70] sm:$0xf0] }
  0xa5   :  { %v242_v13 = vpop.f32.mrf.mxu0  ;;  %v1824_v23 = vpop.f32.mrf.mxu3  ;;  %v1349_v7 = vor.u32 %v1562_v3, %v1346_v5  ;;  %v1578_v3 = vld [vmem:[#allocation7 + $0xc8] sm:$0xf0] }
  0xa7   :  { %762 = vmatpush.bf16.msrb.mxu2 %v1349_v7  ;;  %v1410_v7 = vor.u32 %v1578_v3, %v1409_v2  ;;  %v1591_v2 = vld [vmem:[#allocation7 + $0x3c] sm:$0xf0]  ;;  %v1590_v3 = vld [vmem:[#allocation7 + $0x38] sm:$0xf] }
  0xa8   :  { %657 = vmatpush.bf16.msrb.mxu0 %v1285_v8  ;;  %v1561_v8 = vld [vmem:[#allocation6 + $0x54] sm:$0xf0] }
  0xa9   :  { %v1826_v24 = vpop.f32.mrf.mxu2 }
  0xaa   :  { %v267_v12 = vadd.f32 %v1826_v24, %v119_v10  ;;  %v118_v24 = vperm.slane %v1821_v21, 1  ;;  %v1338_v10 = vld [vmem:[#allocation6 + $0x58] sm:$0xf0] }
  0xac   :  { %658 = vmatpush.bf16.msrb.mxu0 %v1281_v11  ;;  %v254_v38 = vadd.f32 %v1824_v23, %v118_v24  ;;  %v1569_v23 = vld [vmem:[#allocation6 + $0xb4] sm:$0xf0]  ;;  %v1337_v11 = vor.u32 %v1561_v8, %v1336_v16 }
  0xad   :  { %v255_v28 = vpop.f32.mrf.mxu3  ;;  %v1369_v49 = vor.u32 %v1569_v23, %v1368_v47  ;;  %v1585_v47 = vld [vmem:[#allocation7 + $0x170] sm:$0xf0] }
  0xaf   :  { %746 = vmatpush.bf16.msra.mxu1 %v1369_v49  ;;  %v1584_v49 = vld [vmem:[#allocation7 + $0x158] sm:$0xf0] }
  0xb0   :  { %v1434_v50 = vor.u32 %v1584_v49, %v1433_v48 }
  0xb1   :  { %v268_v29 = vpop.f32.mrf.mxu2 }
  0xb3   :  { %747 = vmatpush.bf16.msra.mxu1 %v1361_v55 }
  0xb5   :  { %v1828_v33 = vpop.f32.mrf.mxu3 }
  0xb7   :  { %748 = vmatpush.bf16.msra.mxu1 %v1353_v63  ;;  %v1413_v63 = vld [vmem:[#allocation7 + $0xd8] sm:$0xf] }
  0xb8   :  { %v1414_v1 = vor.u32 %v1579_v0, %v1413_v63 }
  0xb9   :  { %v318_v46 = vpop.f32.mrf.mxu2 }
  0xba   :  { %v438_v26 = vpop.f32.mrf.mxu1 }
  0xbb   :  { %v439_v27 = vadd.f32 %v438_v26, %v241_v25  ;;  %v319_v26 = vadd.f32 %v318_v46, %v123_v22  ;;  %749 = vmatpush.bf16.msra.mxu1 %v1345_v6  ;;  %v122_v6 = vperm.slane %v1821_v21, 5 }
  0xbd   :  { %1611 = vtanh.f32 %v439_v27  ;;  %v281_v34 = vpop.f32.mrf.mxu3  ;;  %v306_v16 = vadd.f32 %v1816_v58, %v122_v6 }
  0xbf   :  { %750 = vmatpush.bf16.msra.mxu1 %v1337_v11 }
  0xc2   :  { %v440_v30 = vpop.f32.mrf.mxu1 }
  0xc3   :  { %v1612_v31 = vpop.eup %1611 }
  0xc4   :  { %v443_v32 = vpack.c.bf16 %v1612_v31, %v1612_v31 }
  0xc5   :  { %v1831_v35 = vpop.f32.mrf.mxu3 }
  0xc6   :  { %532 = vmatmul.bf16.vlgmr.msra.gmra.mxu2 %v443_v32  ;;  %545 = vmatmul.bf16.vlgmr.msrb.gmra.mxu3 %v443_v32 }
  0xcd   :  { %v333_v36 = vpop.f32.mrf.mxu3 }
  0xd2   :  { %v1847_v46 = vpop.f32.mrf.mxu0 }
  0xd3   :  { %v293_v56 = vadd.f32 %v1847_v46, %v121_v52  ;;  %v1449_v46 = vld [vmem:[#allocation7 + $0x1c] sm:$0xf] }
  0xd6   :  { %945 = vmatmul.bf16.vlgmr.msra.gmra.mxu3 %v1807_v4  ;;  %v320_v4 = vpop.f32.mrf.mxu2 }
  0xda   :  { %v294_v4 = vpop.f32.mrf.mxu0 }
  0xdb   :  { %v1437_v4 = vld [vmem:[#allocation7 + $0x168] sm:$0xf] }
  0xdc   :  { %v1438_v23 = vor.u32 %v1585_v47, %v1437_v4  ;;  %v1593_v4 = vld [vmem:[#allocation7 + $0x54] sm:$0xf0]  ;;  %v1592_v47 = vld [vmem:[#allocation7 + $0x50] sm:$0xf] }
  0xde   :  { %950 = vmatpush.bf16.msra.mxu0 %v1438_v23  ;;  %v1467_v23 = vld [vmem:[#allocation7 + $0x58] sm:$0xf0] }
  0xdf   :  { %v1470_v49 = vor.u32 %v1592_v47, %v1467_v23 }
  0xe2   :  { %951 = vmatpush.bf16.msra.mxu0 %v1434_v50 }
  0xe6   :  { %952 = vmatpush.bf16.msra.mxu0 %v1430_v53 }
 0x149   :  { %v533_v13 = vpop.f32.mrf.mxu2  ;;  %v546_v14 = vpop.f32.mrf.mxu3 }
 0x14a   :  { %v547_v15 = vadd.f32 %v546_v14, %v267_v12  ;;  %v534_v41 = vadd.f32 %v533_v13, %v254_v38  ;;  %v1341_v12 = vor.u32 %v1560_v9, %v1338_v10  ;;  %v1849_v13 = vpop.f32.mrf.mxu0 }
 0x14c   :  { %v1277_v17 = vmul.f32 -1.442695, %v547_v15  ;;  %763 = vmatpush.bf16.msrb.mxu2 %v1341_v12  ;;  %v1328_v15 = vld [vmem:[#allocation6 + $0x34] sm:$0xf]  ;;  %v1497_v12 = vld [vmem:[#allocation7 + $0xac] sm:$0xf] }
 0x14e   :  { %1613 = vpow2.f32 %v1277_v17  ;;  %v1559_v17 = vld [vmem:[#allocation6 + $0x3c] sm:$0xf0] }
 0x151   :  { %v535_v18 = vpop.f32.mrf.mxu2  ;;  %v548_v19 = vpop.f32.mrf.mxu3 }
 0x152   :  { %v346_v14 = vpop.f32.mrf.mxu0  ;;  %v1558_v18 = vld [vmem:[#allocation6 + $0x38] sm:$0xf]  ;;  %v1329_v19 = vor.u32 %v1559_v17, %v1328_v15  ;;  %v1600_v17 = vld [vmem:[#allocation7 + $0xb0] sm:$0xf] }
 0x153   :  { %v1601_v14 = vld [vmem:[#allocation7 + $0xb4] sm:$0xf0] }
 0x154   :  { %v1614_v20 = vpop.eup %1613  ;;  %751 = vmatpush.bf16.msra.mxu1 %v1329_v19  ;;  %v1498_v15 = vor.u32 %v1601_v14, %v1497_v12  ;;  %v1489_v19 = vld [vmem:[#allocation7 + $0x94] sm:$0xf]  ;;  %v1441_v12 = vld [vmem:[#allocation7 + $0x4] sm:$0xf]  ;;  %v1587_v14 = vld [vmem:[#allocation7 + $0xc] sm:$0xf0] }
 0x155   :  { %v553_v25 = vadd.f32 1.0, %v1614_v20  ;;  %v1330_v20 = vld [vmem:[#allocation6 + $0x40] sm:$0xf0] }
 0x156   :  { %v1333_v22 = vor.u32 %v1558_v18, %v1330_v20  ;;  %v1499_v18 = vld [vmem:[#allocation7 + $0xb8] sm:$0xf0] }
 0x157   :  { %1615 = vrcp.f32 %v553_v25  ;;  %v565_v32 = vand.u32 2147483648, %v553_v25  ;;  %v563_v37 = vand.u32 2147483647, %v553_v25  ;;  %vm559_vm2 = vweird.f32 %v553_v25 }
 0x158   :  { %764 = vmatpush.bf16.msrb.mxu2 %v1333_v22  ;;  %v1502_v20 = vor.u32 %v1600_v17, %v1499_v18  ;;  %v1599_v22 = vld [vmem:[#allocation7 + $0x9c] sm:$0xf0]  ;;  %v1442_v17 = vor.u32 %v1587_v14, %v1441_v12  ;;  %v1443_v18 = vld [vmem:[#allocation7 + $0x10] sm:$0xf0] }
 0x159   :  { %v946_v27 = vpop.f32.mrf.mxu3  ;;  %v566_v40 = vor.u32 1.1754944e-38, %v565_v32  ;;  %vm564_vm4 = vcmp.eq.f32.partialorder %v563_v37, 8.507059e+37  ;;  %v1555_v32 = vld [vmem:[#allocation6 + $0xc] sm:$0xf0]  ;;  %v1314_v37 = vld [vmem:[#allocation6 + $0x10] sm:$0xf0] }
 0x15a   :  { %v1840_v28 = vadd.f32 %v946_v27, %v319_v26  ;;  %v1557_v26 = vld [vmem:[#allocation6 + $0x24] sm:$0xf0]  ;;  %v1556_v27 = vld [vmem:[#allocation6 + $0x20] sm:$0xf] }
 0x15d   :  { %v1616_v29 = vpop.eup %1615 }
 0x15e   :  { %v555_v30 = vmul.f32 %v1616_v29, %v553_v25  ;;  %vm560_vm1 = vweird.f32 %v1616_v29  ;;  %v1320_v25 = vld [vmem:[#allocation6 + $0x1c] sm:$0xf] }
 0x15f   :  { %vm561_vm3 = vmor %vm559_vm2, %vm560_vm1 }
 0x160   :  { %v556_v31 = vsub.f32 1.0, %v555_v30  ;;  %v1322_v30 = vld [vmem:[#allocation6 + $0x28] sm:$0xf0] }
 0x161   :  { %v948_v34 = vpop.f32.mrf.mxu3  ;;  %v1325_v24 = vor.u32 %v1556_v27, %v1322_v30  ;;  %v1490_v27 = vor.u32 %v1599_v22, %v1489_v19  ;;  %v1597_v30 = vld [vmem:[#allocation7 + $0x84] sm:$0xf0] }
 0x162   :  { %v557_v36 = vmul.f32 %v1616_v29, %v556_v31  ;;  %v1312_v31 = vld [vmem:[#allocation6 + $0x4] sm:$0xf]  ;;  %v1554_v34 = vld [vmem:[#allocation6 + $0x8] sm:$0xf] }
 0x163   :  { %765 = vmatpush.bf16.msrb.mxu2 %v1325_v24  ;;  %v1317_v38 = vor.u32 %v1554_v34, %v1314_v37 }
 0x164   :  { %v558_v39 = vadd.f32 %v1616_v29, %v557_v36  ;;  %v1313_v36 = vor.u32 %v1555_v32, %v1312_v31  ;;  %v1596_v31 = vld [vmem:[#allocation7 + $0x80] sm:$0xf]  ;;  %v1483_v32 = vld [vmem:[#allocation7 + $0x88] sm:$0xf0] }
 0x165   :  { %v1486_v37 = vor.u32 %v1596_v31, %v1483_v32 }
 0x166   :  { %v562_v42 = vsel %vm561_vm3, %v1616_v29, %v558_v39  ;;  %v1321_v29 = vor.u32 %v1557_v26, %v1320_v25  ;;  %v120_v39 = vperm.slane %v1821_v21, 3  ;;  %v1598_v25 = vld [vmem:[#allocation7 + $0x98] sm:$0xf]  ;;  %v1491_v26 = vld [vmem:[#allocation7 + $0xa0] sm:$0xf0] }
 0x167   :  { %v567_v43 = vsel %vm564_vm4, %v566_v40, %v562_v42  ;;  %766 = vmatpush.bf16.msrb.mxu2 %v1317_v38  ;;  %v1494_v58 = vor.u32 %v1598_v25, %v1491_v26  ;;  %v1473_v38 = vld [vmem:[#allocation7 + $0x64] sm:$0xf] }
 0x168   :  { %v569_v44 = vmul.f32 %v567_v43, %v534_v41  ;;  %752 = vmatpush.bf16.msra.mxu1 %v1321_v29  ;;  %v280_v40 = vadd.f32 %v1828_v33, %v120_v39  ;;  %v1425_v33 = vld [vmem:[#allocation7 + $0x120] sm:$0xf]  ;;  %v1481_v29 = vld [vmem:[#allocation7 + $0x7c] sm:$0xf]  ;;  %v1595_v39 = vld [vmem:[#allocation7 + $0x6c] sm:$0xf0] }
 0x169   :  { %v1426_v55 = vor.u32 %v1582_v54, %v1425_v33  ;;  %v1482_v34 = vor.u32 %v1597_v30, %v1481_v29  ;;  %v1610_v29 = vld [vmem:[%s1873_s3 + $0x8] ss:$0 sm:$0xff] }
 0x16a   :  { %v602_v45 = vpack.c.bf16 %v569_v44, %v569_v44  ;;  %1091 = vst [vmem:[%s1877_s7] sm:$0xff] %v569_v44  ;;  %v345_v30 = vadd.f32 %v1610_v29, %v1849_v13 }
 0x16b   :  { %953 = vmatpush.bf16.msra.mxu0 %v1426_v55  ;;  %1058 = vmatpush.bf16.msra.mxu2 %v1502_v20 }
 0x16c   :  { %659 = vmatmul.bf16.vlgmr.msrb.gmra.mxu0 %v602_v45  ;;  %753 = vmatpush.bf16.msra.mxu1 %v1313_v36 }
 0x16f   :  { %954 = vmatpush.bf16.msra.mxu0 %v1422_v59  ;;  %1059 = vmatpush.bf16.msra.mxu2 %v1494_v58 }
 0x170   :  { %1045 = vmatpush.bf16.msrb.mxu1 %v1498_v15  ;;  %v1586_v15 = vld [vmem:[#allocation7 + $0x8] sm:$0xf] }
 0x171   :  { %v1446_v19 = vor.u32 %v1586_v15, %v1443_v18 }
 0x173   :  { %955 = vmatpush.bf16.msra.mxu0 %v1418_v62  ;;  %1060 = vmatpush.bf16.msra.mxu2 %v1486_v37 }
 0x174   :  { %1046 = vmatpush.bf16.msrb.mxu1 %v1490_v27 }
 0x177   :  { %956 = vmatpush.bf16.msra.mxu0 %v1414_v1  ;;  %v1457_v1 = vld [vmem:[#allocation7 + $0x34] sm:$0xf] }
 0x178   :  { %1047 = vmatpush.bf16.msrb.mxu1 %v1482_v34  ;;  %v1458_v6 = vor.u32 %v1591_v2, %v1457_v1 }
 0x17b   :  { %957 = vmatpush.bf16.msra.mxu0 %v1410_v7  ;;  %v1459_v7 = vld [vmem:[#allocation7 + $0x40] sm:$0xf0] }
 0x1e9   :  { %v660_v41 = vpop.f32.mrf.mxu0 }
 0x1ea   :  { %v661_v42 = vadd.f32 %v660_v41, %v280_v40  ;;  %v1594_v41 = vld [vmem:[#allocation7 + $0x68] sm:$0xf] }
 0x1ec   :  { %1617 = vtanh.f32 %v661_v42  ;;  %v1475_v42 = vld [vmem:[#allocation7 + $0x70] sm:$0xf0] }
 0x1f1   :  { %v662_v43 = vpop.f32.mrf.mxu0 }
 0x1f2   :  { %v1618_v44 = vpop.eup %1617  ;;  %v1474_v43 = vor.u32 %v1595_v39, %v1473_v38 }
 0x1f3   :  { %v665_v45 = vpack.c.bf16 %v1618_v44, %v1618_v44  ;;  %v1478_v44 = vor.u32 %v1594_v41, %v1475_v42 }
 0x1f4   :  { %1048 = vmatpush.bf16.msrb.mxu1 %v1474_v43 }
 0x1f5   :  { %754 = vmatmul.bf16.vlgmr.msra.gmra.mxu1 %v665_v45  ;;  %767 = vmatmul.bf16.vlgmr.msrb.gmra.mxu2 %v665_v45  ;;  %v1465_v45 = vld [vmem:[#allocation7 + $0x4c] sm:$0xf] }
 0x1f6   :  { %v1466_v48 = vor.u32 %v1593_v4, %v1465_v45  ;;  %1061 = vmatpush.bf16.msra.mxu2 %v1478_v44 }
 0x1f8   :  { %1049 = vmatpush.bf16.msrb.mxu1 %v1466_v48 }
 0x1fa   :  { %1062 = vmatpush.bf16.msra.mxu2 %v1470_v49 }
 0x1fc   :  { %1050 = vmatpush.bf16.msrb.mxu1 %v1458_v6 }
 0x272   :  { %v1853_v5 = vpop.f32.mrf.mxu1 }
 0x273   :  { %v756_v60 = vadd.f32 %v1853_v5, %v293_v56 }
 0x278   :  { %v768_v8 = vpop.f32.mrf.mxu2 }
 0x279   :  { %v769_v9 = vadd.f32 %v768_v8, %v306_v16  ;;  %v1462_v16 = vor.u32 %v1590_v3, %v1459_v7  ;;  %v1589_v8 = vld [vmem:[#allocation7 + $0x24] sm:$0xf0] }
 0x27a   :  { %v757_v10 = vpop.f32.mrf.mxu1 }
 0x27b   :  { %v1374_v11 = vmul.f32 -1.442695, %v769_v9  ;;  %1063 = vmatpush.bf16.msra.mxu2 %v1462_v16  ;;  %v1588_v9 = vld [vmem:[#allocation7 + $0x20] sm:$0xf]  ;;  %v1450_v10 = vor.u32 %v1589_v8, %v1449_v46 }
 0x27d   :  { %1619 = vpow2.f32 %v1374_v11  ;;  %v1451_v11 = vld [vmem:[#allocation7 + $0x28] sm:$0xf0]  ;;  %1051 = vmatpush.bf16.msrb.mxu1 %v1450_v10 }
 0x27e   :  { %v1454_v5 = vor.u32 %v1588_v9, %v1451_v11 }
 0x280   :  { %v770_v24 = vpop.f32.mrf.mxu2  ;;  %1064 = vmatpush.bf16.msra.mxu2 %v1454_v5 }
 0x281   :  { %1052 = vmatpush.bf16.msrb.mxu1 %v1442_v17 }
 0x283   :  { %v1620_v36 = vpop.eup %1619 }
 0x284   :  { %v775_v40 = vadd.f32 1.0, %v1620_v36  ;;  %1065 = vmatpush.bf16.msra.mxu2 %v1446_v19 }
 0x286   :  { %1621 = vrcp.f32 %v775_v40  ;;  %v787_v33 = vand.u32 2147483648, %v775_v40  ;;  %v785_v55 = vand.u32 2147483647, %v775_v40  ;;  %vm781_vm6 = vweird.f32 %v775_v40 }
 0x288   :  { %v788_v59 = vor.u32 1.1754944e-38, %v787_v33  ;;  %vm786_vm8 = vcmp.eq.f32.partialorder %v785_v55, 8.507059e+37 }
 0x28c   :  { %v1622_v50 = vpop.eup %1621 }
 0x28d   :  { %v777_v51 = vmul.f32 %v1622_v50, %v775_v40  ;;  %vm782_vm5 = vweird.f32 %v1622_v50  ;;  %v124_v40 = vperm.slane %v1821_v21, 7 }
 0x28e   :  { %vm783_vm7 = vmor %vm781_vm6, %vm782_vm5 }
 0x28f   :  { %v778_v53 = vsub.f32 1.0, %v777_v51  ;;  %v332_v13 = vadd.f32 %v1831_v35, %v124_v40 }
 0x291   :  { %v779_v54 = vmul.f32 %v1622_v50, %v778_v53 }
 0x293   :  { %v780_v57 = vadd.f32 %v1622_v50, %v779_v54 }
 0x295   :  { %v784_v61 = vsel %vm783_vm7, %v1622_v50, %v780_v57 }
 0x296   :  { %v789_v62 = vsel %vm786_vm8, %v788_v59, %v784_v61 }
 0x297   :  { %v791_v63 = vmul.f32 %v789_v62, %v756_v60 }
 0x299   :  { %v840_v0 = vpack.c.bf16 %v791_v63, %v791_v63 }
 0x29b   :  { %958 = vmatmul.bf16.vlgmr.msra.gmra.mxu0 %v840_v0 }
 0x318   :  { %v959_v20 = vpop.f32.mrf.mxu0 }
 0x319   :  { %v960_v22 = vadd.f32 %v959_v20, %v1840_v28 }
 0x31b   :  { %1623 = vtanh.f32 %v960_v22 }
 0x320   :  { %v961_v25 = vpop.f32.mrf.mxu0 }
 0x321   :  { %v1624_v26 = vpop.eup %1623 }
 0x322   :  { %v964_v27 = vpack.c.bf16 %v1624_v26, %v1624_v26 }
 0x324   :  { %1053 = vmatmul.bf16.vlgmr.msrb.gmra.mxu1 %v964_v27  ;;  %1066 = vmatmul.bf16.vlgmr.msra.gmra.mxu2 %v964_v27 }
 0x3a1   :  { %v1054_v58 = vpop.f32.mrf.mxu1 }
 0x3a2   :  { %v1055_v47 = vadd.f32 %v1054_v58, %v332_v13 }
 0x3a7   :  { %v1067_v24 = vpop.f32.mrf.mxu2 }
 0x3a8   :  { %v1068_v31 = vadd.f32 %v1067_v24, %v345_v30 }
 0x3a9   :  { %v1056_v32 = vpop.f32.mrf.mxu1 }
 0x3aa   :  { %v1503_v34 = vmul.f32 -1.442695, %v1068_v31 }
 0x3ac   :  { %1625 = vpow2.f32 %v1503_v34 }
 0x3af   :  { %v1069_v36 = vpop.f32.mrf.mxu2 }
 0x3b2   :  { %v1626_v28 = vpop.eup %1625 }
 0x3b3   :  { %v1074_v37 = vadd.f32 1.0, %v1626_v28 }
 0x3b5   :  { %1627 = vrcp.f32 %v1074_v37  ;;  %v1086_v42 = vand.u32 2147483648, %v1074_v37  ;;  %v1084_v44 = vand.u32 2147483647, %v1074_v37  ;;  %vm1080_vm10 = vweird.f32 %v1074_v37 }
 0x3b7   :  { %v1087_v4 = vor.u32 1.1754944e-38, %v1086_v42  ;;  %vm1085_vm12 = vcmp.eq.f32.partialorder %v1084_v44, 8.507059e+37 }
 0x3bb   :  { %v1628_v38 = vpop.eup %1627 }
 0x3bc   :  { %v1076_v39 = vmul.f32 %v1628_v38, %v1074_v37  ;;  %vm1081_vm9 = vweird.f32 %v1628_v38 }
 0x3bd   :  { %vm1082_vm11 = vmor %vm1080_vm10, %vm1081_vm9 }
 0x3be   :  { %v1077_v41 = vsub.f32 1.0, %v1076_v39 }
 0x3c0   :  { %v1078_v43 = vmul.f32 %v1628_v38, %v1077_v41 }
 0x3c2   :  { %v1079_v45 = vadd.f32 %v1628_v38, %v1078_v43 }
 0x3c4   :  { %v1083_v23 = vsel %vm1082_vm11, %v1628_v38, %v1079_v45 }
 0x3c5   :  { %v1088_v48 = vsel %vm1085_vm12, %v1087_v4, %v1083_v23 }
 0x3c6   :  { %v1090_v49 = vmul.f32 %v1088_v48, %v1055_v47 }
 0x3c8   :  { %1092 = vst [vmem:[%s1877_s7 + $0x8] sm:$0xff] %v1090_v49 }
 0x3c9   :  { %1097 = vsyncpa [#allocation3], 1 }
 0x3ca   :  { %1098 = vsyncpa [#allocation5], 1 }
 0x3cb   :  { %1099 = vsyncpa [#allocation8], 1 }

</bundles_post_ra>
